<compile_context>
chip_gen: v6e
topology: v6e:2x2x1
jax: 0.10.0
libtpu: 0.0.40
codegen_flags: <defaults>
</compile_context>

<pallas_src>
import functools
import numpy as np

import jax
import jax.numpy as jnp
from jax.experimental import pallas as pl
from jax.experimental.pallas import tpu as pltpu

_LANE = 128
_DEFAULT_TILE_M_MAX = 1024


def _round_up(x, m):
    return (x + m - 1) // m * m


def _cdiv(a, b):
    return (a + b - 1) // b


def _packed_sublane(dtype):
    """Packed-sublane multiple: 8 for f32, 16 for bf16/f16, 32 for int8/fp8."""
    return max(8, 32 // np.dtype(dtype).itemsize)


@functools.lru_cache(maxsize=None)
def _vmem_budget_bytes():
    """Generation-aware VMEM budget: physical capacity minus headroom."""
    phys = 64 * 2**20  # conservative default (v7x per-TC)
    try:
        info = pltpu.get_tpu_info()
        phys = int(getattr(info, "vmem_capacity_bytes", phys))
    except Exception:
        pass
    headroom = max(8 * 2**20, phys // 8)  # ~8 MiB on v7x, ~16 MiB on v5e/v6e
    return max(32 * 2**20, phys - headroom)


@functools.lru_cache(maxsize=None)
def _single_buffered_params_supported():
    """Narrow one-time capability probe: grid-invariant inputs with Buffered(1).

    This is a tiny throwaway kernel, NOT a fallback wrapped around the real
    pallas_call, so genuine errors in the real kernel are never masked.
    """
    if not hasattr(pl, "Buffered"):
        return False

    def probe_kernel(p_ref, x_ref, o_ref):
        o_ref[...] = x_ref[...] + p_ref[...]

    try:
        f = pl.pallas_call(
            probe_kernel,
            out_shape=jax.ShapeDtypeStruct((16, 128), jnp.float32),
            grid=(2,),
            in_specs=[
                pl.BlockSpec((8, 128), lambda i: (0, 0),
                             pipeline_mode=pl.Buffered(1)),
                pl.BlockSpec((8, 128), lambda i: (i, 0)),
            ],
            out_specs=pl.BlockSpec((8, 128), lambda i: (i, 0)),
        )
        jax.block_until_ready(
            f(jnp.zeros((8, 128), jnp.float32),
              jnp.zeros((16, 128), jnp.float32)))
        return True
    except Exception:
        return False


def _make_multilinear_kernel(num_layers, activation_flags, negative_slope):
    """Fused kernel: x tile + all resident (W, b) -> out tile."""
    use_max = 0.0 <= negative_slope <= 1.0  # max-form only valid for slope in [0, 1]

    def kernel(x_ref, *refs):
        # refs = (w0, b0, w1, b1, ..., w_{L-1}, b_{L-1}, out_ref)
        out_ref = refs[-1]
        h = x_ref[...]
        for l in range(num_layers):
            w = refs[2 * l][...]        # (in_l, out_l), native dtype
            b = refs[2 * l + 1][...]    # (1, out_l)
            # Native-dtype MXU matmul, f32 accumulation; only the running
            # activation h stays f32 between layers.
            h = jnp.dot(h.astype(w.dtype), w, preferred_element_type=jnp.float32)
            h = h + b.astype(jnp.float32)
            if activation_flags[l]:
                if use_max:
                    h = jnp.maximum(h, negative_slope * h)   # LeakyReLU, 2 VALU ops
                else:
                    h = jnp.where(h >= 0, h, negative_slope * h)
        out_ref[...] = h.astype(out_ref.dtype)

    return kernel


def prepare_multi_linear_params(weights, biases):
    """One-time lane-padding of parameters (hoisted out of the forward path).

    weights: list of (in_l, out_l) arrays (already transposed vs PyTorch)
    biases:  list of (out_l,) or (1, out_l) arrays
    """
    num_layers = len(weights)
    if num_layers == 0:
        return {"num_layers": 0}

    in_size = int(weights[0].shape[0])
    out_size = int(weights[-1].shape[1])
    in_p = _round_up(in_size, _LANE)
    w_pad, b_pad, widths = [], [], [in_p]
    for w, b in zip(weights, biases):
        i, o = int(w.shape[0]), int(w.shape[1])
        ip, op = _round_up(i, _LANE), _round_up(o, _LANE)
        # Zero padding is numerically inert (zero weight columns/rows, zero bias).
        w_pad.append(jnp.pad(w, ((0, ip - i), (0, op - o))))
        b_pad.append(jnp.pad(jnp.reshape(b, (1, -1)), ((0, 0), (0, op - o))))
        widths.append(op)

    return {
        "num_layers": num_layers,
        "in_size": in_size,
        "out_size": out_size,
        "in_p": in_p,
        "out_p": widths[-1],
        "widths": tuple(widths),
        "weights": tuple(w_pad),
        "biases": tuple(b_pad),
    }


def multi_linear_forward(x, params, *, activation_flags, negative_slope=0.01,
                         tile_m_max=_DEFAULT_TILE_M_MAX):
    """Forward pass of MultiLinear (eval semantics: dropout = identity).

    x:      (..., input_size)
    params: output of prepare_multi_linear_params(weights, biases)
    """
    num_layers = params["num_layers"]
    if num_layers == 0:
        return x  # identity model (num_layers == 0)
    assert len(activation_flags) == num_layers

    orig_lead = x.shape[:-1]
    in_size = x.shape[-1]
    assert in_size == params["in_size"], (in_size, params["in_size"])
    out_size = params["out_size"]
    in_p, out_p = params["in_p"], params["out_p"]
    widths = params["widths"]
    w_pad, b_pad = params["weights"], params["biases"]

    m = int(np.prod(orig_lead)) if orig_lead else 1

    itemsize = np.dtype(x.dtype).itemsize
    sub = _packed_sublane(x.dtype)

    # ---- VMEM accounting (generation-aware) -------------------------------
    single_buf = _single_buffered_params_supported()
    buf_factor = 1 if single_buf else 2
    param_bytes = buf_factor * sum(
        int(p.size) * np.dtype(p.dtype).itemsize for p in (*w_pad, *b_pad))

    budget = _vmem_budget_bytes()
    max_w = max(widths)
    # Per-row cost: double-buffered x/out tiles + f32 intermediate activations
    # (compiler may hold ~2 layer widths live at once).
    per_row = 2 * (in_p + out_p) * itemsize + 2 * 4 * max_w

    avail = budget - param_bytes
    if avail < sub * per_row:
        # TODO(synk): add an N-tiled (per-layer output-dim tiled) weight path for
        # parameter sets exceeding a single TensorCore's VMEM (relevant on v7x).
        raise ValueError(
            f"MultiLinear parameters ({param_bytes / 2**20:.1f} MiB, "
            f"{'single' if single_buf else 'double'}-buffered) leave no room for "
            f"a {sub}-row tile within the {budget / 2**20:.1f} MiB VMEM budget.")

    # ---- row tiling: as big as the budget allows, balanced, >= 2 grid steps ---
    tile_cap = min(int(avail // per_row), int(tile_m_max))
    tile_cap = max(sub, tile_cap // sub * sub)

    min_tiles = 2 if m > sub else 1                 # keep both v7x TCs busy
    n_tiles = max(_cdiv(m, tile_cap), min_tiles)
    tile_m = _round_up(_cdiv(m, n_tiles), sub)      # balanced -> little last-tile waste
    m_pad = tile_m * n_tiles

    x2 = x.reshape(m, in_size)
    if m_pad != m or in_p != in_size:
        x2 = jnp.pad(x2, ((0, m_pad - m), (0, in_p - in_size)))

    kernel = _make_multilinear_kernel(num_layers, tuple(activation_flags),
                                      float(negative_slope))

    def param_spec(shape):
        # Grid-invariant resident blocks: single-buffer when supported.
        if single_buf:
            return pl.BlockSpec(shape, lambda i: (0, 0),
                                pipeline_mode=pl.Buffered(1))
        return pl.BlockSpec(shape, lambda i: (0, 0))

    in_specs = [pl.BlockSpec((tile_m, in_p), lambda i: (i, 0))]
    flat_params = []
    for w, b in zip(w_pad, b_pad):
        in_specs.append(param_spec(w.shape))
        in_specs.append(param_spec(b.shape))
        flat_params.extend((w, b))
    out_spec = pl.BlockSpec((tile_m, out_p), lambda i: (i, 0))

    need = param_bytes + tile_m * per_row
    vmem_limit = int(min(budget, max(need + 4 * 2**20, 32 * 2**20)))

    out2 = pl.pallas_call(
        kernel,
        out_shape=jax.ShapeDtypeStruct((m_pad, out_p), x.dtype),
        grid_spec=pltpu.PrefetchScalarGridSpec(
            num_scalar_prefetch=0,
            grid=(n_tiles,),
            in_specs=in_specs,
            out_specs=out_spec,
        ),
        compiler_params=pltpu.CompilerParams(
            dimension_semantics=("parallel",),
            vmem_limit_bytes=vmem_limit,
        ),
    )(x2, *flat_params)

    if m_pad != m or out_p != out_size:
        out2 = out2[:m, :out_size]
    return out2.reshape(*orig_lead, out_size)


def init_multi_linear_params(key, input_size, hidden_size, output_size,
                             num_layers, dtype=jnp.float32):
    """Deterministic init mimicking torch.nn.Linear default U(-1/sqrt(fan_in), +)."""
    sizes_in = [input_size] + [hidden_size] * (num_layers - 1)
    sizes_out = [hidden_size] * (num_layers - 1) + [output_size]
    weights, biases = [], []
    for i, o in zip(sizes_in, sizes_out):
        key, kw, kb = jax.random.split(key, 3)
        bound = 1.0 / np.sqrt(i)
        # stored as (in, out) == transpose of PyTorch's (out, in)
        w = jax.random.uniform(kw, (i, o), dtype, minval=-bound, maxval=bound)
        b = jax.random.uniform(kb, (1, o), dtype, minval=-bound, maxval=bound)
        weights.append(w)
        biases.append(b)
    return weights, biases


def multi_linear_reference(x, weights, biases, activation_flags, negative_slope=0.01):
    """Plain-JAX reference for correctness checking."""
    h = x.astype(jnp.float32)
    for l, (w, b) in enumerate(zip(weights, biases)):
        h = h @ w.astype(jnp.float32) + jnp.reshape(b, (1, -1)).astype(jnp.float32)
        if activation_flags[l]:
            h = jnp.where(h >= 0, h, negative_slope * h)
    return h.reshape(*x.shape[:-1], weights[-1].shape[1]).astype(x.dtype)


if __name__ == "__main__":
    # Small shapes consistent with the module: x has shape (..., input_size).
    batch, seq = 2, 7               # leading dims flatten to M = 14 (exercises M padding)
    input_size, hidden_size, output_size = 32, 64, 16
    num_layers = 3

    key = jax.random.PRNGKey(0)
    key, kx = jax.random.split(key)
    x = jax.random.normal(kx, (batch, seq, input_size), dtype=jnp.float32)

    weights, biases = init_multi_linear_params(
        key, input_size, hidden_size, output_size, num_layers)

    # Module defaults: dropout_last=False, activation_last=False
    #   -> LeakyReLU(0.01) after every layer except the last; dropout(p=0) = identity.
    activation_flags = [True] * (num_layers - 1) + [False]

    # One-time parameter prep (lane padding hoisted out of the forward path).
    prepared = prepare_multi_linear_params(weights, biases)

    fwd = functools.partial(multi_linear_forward,
                            activation_flags=activation_flags,
                            negative_slope=0.01)

    out = jax.block_until_ready(fwd(x, prepared))
    assert out.shape == (batch, seq, output_size), out.shape

    ref = multi_linear_reference(x, weights, biases, activation_flags)
    np.testing.assert_allclose(np.asarray(out), np.asarray(ref.reshape(out.shape)),
                               rtol=1e-5, atol=1e-5)

    print("KERNEL_OK")
</pallas_src>

<mosaic_0001>
module attributes {stable_mosaic.version = 11 : i64} {
  func.func @probe_kernel(%arg0: i32, %arg1: memref<8x128xf32, #tpu.memory_space<vmem>>, %arg2: memref<8x128xf32, #tpu.memory_space<vmem>>, %arg3: memref<8x128xf32, #tpu.memory_space<vmem>>) attributes {dimension_semantics = [#tpu.dimension_semantics<arbitrary>], iteration_bounds = array<i64: 2>, scalar_prefetch = 0 : i64, scratch_operands = 0 : i64, tpu.core_type = #tpu.core_type<tc>, window_params = [{pipeline_mode = #tpu.pipeline_mode<synchronous>, transform_indices = @transform_0, window_bounds = array<i64: 8, 128>}, {transform_indices = @transform_1, window_bounds = array<i64: 8, 128>}, {transform_indices = @transform_2, window_bounds = array<i64: 8, 128>}]} {
    %c0 = arith.constant 0 : index
    %c0_0 = arith.constant 0 : index
    %0 = vector.load %arg2[%c0, %c0_0] : memref<8x128xf32, #tpu.memory_space<vmem>>, vector<8x128xf32>
    %c0_1 = arith.constant 0 : index
    %c0_2 = arith.constant 0 : index
    %1 = vector.load %arg1[%c0_1, %c0_2] : memref<8x128xf32, #tpu.memory_space<vmem>>, vector<8x128xf32>
    %2 = arith.addf %0, %1 : vector<8x128xf32>
    %c0_3 = arith.constant 0 : index
    %c0_4 = arith.constant 0 : index
    %3 = vector.load %arg3[%c0_3, %c0_4] : memref<8x128xf32, #tpu.memory_space<vmem>>, vector<8x128xf32>
    tpu.vector_store %arg3[%c0_3, %c0_4], %2 {strides = array<i32>} : memref<8x128xf32, #tpu.memory_space<vmem>>, vector<8x128xf32>,
    return
  }
  func.func @transform_0(%arg0: i32) -> (i32, i32) {
    %c0_i32 = arith.constant 0 : i32
    %c0_i32_0 = arith.constant 0 : i32
    %c0_i32_1 = arith.constant 0 : i32
    return %c0_i32, %c0_i32_0 : i32, i32
  }
  func.func @transform_1(%arg0: i32) -> (i32, i32) {
    %c0_i32 = arith.constant 0 : i32
    %c0_i32_0 = arith.constant 0 : i32
    return %arg0, %c0_i32 : i32, i32
  }
  func.func @transform_2(%arg0: i32) -> (i32, i32) {
    %c0_i32 = arith.constant 0 : i32
    %c0_i32_0 = arith.constant 0 : i32
    return %arg0, %c0_i32 : i32, i32
  }
}

module attributes {stable_mosaic.version = 11 : i64} {
  func.func @kernel(%arg0: i32, %arg1: memref<8x128xf32, #tpu.memory_space<vmem>>, %arg2: memref<128x128xf32, #tpu.memory_space<vmem>>, %arg3: memref<1x128xf32, #tpu.memory_space<vmem>>, %arg4: memref<128x128xf32, #tpu.memory_space<vmem>>, %arg5: memref<1x128xf32, #tpu.memory_space<vmem>>, %arg6: memref<128x128xf32, #tpu.memory_space<vmem>>, %arg7: memref<1x128xf32, #tpu.memory_space<vmem>>, %arg8: memref<8x128xf32, #tpu.memory_space<vmem>>) attributes {dimension_semantics = [#tpu.dimension_semantics<parallel>], iteration_bounds = array<i64: 2>, scalar_prefetch = 0 : i64, scratch_operands = 0 : i64, tpu.core_type = #tpu.core_type<tc>, window_params = [{transform_indices = @transform_0, window_bounds = array<i64: 8, 128>}, {pipeline_mode = #tpu.pipeline_mode<synchronous>, transform_indices = @transform_1, window_bounds = array<i64: 128, 128>}, {pipeline_mode = #tpu.pipeline_mode<synchronous>, transform_indices = @transform_2, window_bounds = array<i64: 1, 128>}, {pipeline_mode = #tpu.pipeline_mode<synchronous>, transform_indices = @transform_3, window_bounds = array<i64: 128, 128>}, {pipeline_mode = #tpu.pipeline_mode<synchronous>, transform_indices = @transform_4, window_bounds = array<i64: 1, 128>}, {pipeline_mode = #tpu.pipeline_mode<synchronous>, transform_indices = @transform_5, window_bounds = array<i64: 128, 128>}, {pipeline_mode = #tpu.pipeline_mode<synchronous>, transform_indices = @transform_6, window_bounds = array<i64: 1, 128>}, {transform_indices = @transform_7, window_bounds = array<i64: 8, 128>}]} {
    %c0 = arith.constant 0 : index
    %c0_0 = arith.constant 0 : index
    %0 = vector.load %arg1[%c0, %c0_0] : memref<8x128xf32, #tpu.memory_space<vmem>>, vector<8x128xf32>
    %c0_1 = arith.constant 0 : index
    %c0_2 = arith.constant 0 : index
    %1 = vector.load %arg2[%c0_1, %c0_2] : memref<128x128xf32, #tpu.memory_space<vmem>>, vector<128x128xf32>
    %c0_3 = arith.constant 0 : index
    %c0_4 = arith.constant 0 : index
    %2 = vector.load %arg3[%c0_3, %c0_4] : memref<1x128xf32, #tpu.memory_space<vmem>>, vector<1x128xf32>
    %cst = arith.constant dense<0.000000e+00> : vector<8x128xf32>
    %3 = tpu.matmul %0, %1, %cst {dimension_numbers = #tpu.dot_dimension_numbers<[1], [0], [0], [1], [0, 0, 1, 1], [], []>} : vector<8x128xf32>, vector<128x128xf32>, vector<8x128xf32> -> vector<8x128xf32>
    %4 = vector.broadcast %2 : vector<1x128xf32> to vector<8x128xf32>
    %5 = arith.addf %3, %4 : vector<8x128xf32>
    %cst_5 = arith.constant 0.00999999977 : f32
    %6 = vector.broadcast %cst_5 : f32 to vector<8x128xf32>
    %7 = arith.mulf %6, %5 : vector<8x128xf32>
    %8 = arith.maximumf %5, %7 : vector<8x128xf32>
    %c0_6 = arith.constant 0 : index
    %c0_7 = arith.constant 0 : index
    %9 = vector.load %arg4[%c0_6, %c0_7] : memref<128x128xf32, #tpu.memory_space<vmem>>, vector<128x128xf32>
    %c0_8 = arith.constant 0 : index
    %c0_9 = arith.constant 0 : index
    %10 = vector.load %arg5[%c0_8, %c0_9] : memref<1x128xf32, #tpu.memory_space<vmem>>, vector<1x128xf32>
    %cst_10 = arith.constant dense<0.000000e+00> : vector<8x128xf32>
    %11 = tpu.matmul %8, %9, %cst_10 {dimension_numbers = #tpu.dot_dimension_numbers<[1], [0], [0], [1], [0, 0, 1, 1], [], []>} : vector<8x128xf32>, vector<128x128xf32>, vector<8x128xf32> -> vector<8x128xf32>
    %12 = vector.broadcast %10 : vector<1x128xf32> to vector<8x128xf32>
    %13 = arith.addf %11, %12 : vector<8x128xf32>
    %cst_11 = arith.constant 0.00999999977 : f32
    %14 = vector.broadcast %cst_11 : f32 to vector<8x128xf32>
    %15 = arith.mulf %14, %13 : vector<8x128xf32>
    %16 = arith.maximumf %13, %15 : vector<8x128xf32>
    %c0_12 = arith.constant 0 : index
    %c0_13 = arith.constant 0 : index
    %17 = vector.load %arg6[%c0_12, %c0_13] : memref<128x128xf32, #tpu.memory_space<vmem>>, vector<128x128xf32>
    %c0_14 = arith.constant 0 : index
    %c0_15 = arith.constant 0 : index
    %18 = vector.load %arg7[%c0_14, %c0_15] : memref<1x128xf32, #tpu.memory_space<vmem>>, vector<1x128xf32>
    %cst_16 = arith.constant dense<0.000000e+00> : vector<8x128xf32>
    %19 = tpu.matmul %16, %17, %cst_16 {dimension_numbers = #tpu.dot_dimension_numbers<[1], [0], [0], [1], [0, 0, 1, 1], [], []>} : vector<8x128xf32>, vector<128x128xf32>, vector<8x128xf32> -> vector<8x128xf32>
    %20 = vector.broadcast %18 : vector<1x128xf32> to vector<8x128xf32>
    %21 = arith.addf %19, %20 : vector<8x128xf32>
    %c0_17 = arith.constant 0 : index
    %c0_18 = arith.constant 0 : index
    %22 = vector.load %arg8[%c0_17, %c0_18] : memref<8x128xf32, #tpu.memory_space<vmem>>, vector<8x128xf32>
    tpu.vector_store %arg8[%c0_17, %c0_18], %21 {strides = array<i32>} : memref<8x128xf32, #tpu.memory_space<vmem>>, vector<8x128xf32>,
    return
  }
  func.func @transform_0(%arg0: i32) -> (i32, i32) {
    %c0_i32 = arith.constant 0 : i32
    %c0_i32_0 = arith.constant 0 : i32
    return %arg0, %c0_i32 : i32, i32
  }
  func.func @transform_1(%arg0: i32) -> (i32, i32) {
    %c0_i32 = arith.constant 0 : i32
    %c0_i32_0 = arith.constant 0 : i32
    %c0_i32_1 = arith.constant 0 : i32
    return %c0_i32, %c0_i32_0 : i32, i32
  }
  func.func @transform_2(%arg0: i32) -> (i32, i32) {
    %c0_i32 = arith.constant 0 : i32
    %c0_i32_0 = arith.constant 0 : i32
    %c0_i32_1 = arith.constant 0 : i32
    return %c0_i32, %c0_i32_0 : i32, i32
  }
  func.func @transform_3(%arg0: i32) -> (i32, i32) {
    %c0_i32 = arith.constant 0 : i32
    %c0_i32_0 = arith.constant 0 : i32
    %c0_i32_1 = arith.constant 0 : i32
    return %c0_i32, %c0_i32_0 : i32, i32
  }
  func.func @transform_4(%arg0: i32) -> (i32, i32) {
    %c0_i32 = arith.constant 0 : i32
    %c0_i32_0 = arith.constant 0 : i32
    %c0_i32_1 = arith.constant 0 : i32
    return %c0_i32, %c0_i32_0 : i32, i32
  }
  func.func @transform_5(%arg0: i32) -> (i32, i32) {
    %c0_i32 = arith.constant 0 : i32
    %c0_i32_0 = arith.constant 0 : i32
    %c0_i32_1 = arith.constant 0 : i32
    return %c0_i32, %c0_i32_0 : i32, i32
  }
  func.func @transform_6(%arg0: i32) -> (i32, i32) {
    %c0_i32 = arith.constant 0 : i32
    %c0_i32_0 = arith.constant 0 : i32
    %c0_i32_1 = arith.constant 0 : i32
    return %c0_i32, %c0_i32_0 : i32, i32
  }
  func.func @transform_7(%arg0: i32) -> (i32, i32) {
    %c0_i32 = arith.constant 0 : i32
    %c0_i32_0 = arith.constant 0 : i32
    return %arg0, %c0_i32 : i32, i32
  }
}

</mosaic_0001>

<bundles_post_ra>
// kernel: tpu_custom_call.1
= control target key start
LH: loop header
LB: loop body
LE: loop exit
PB: predicated region body
PF: predicated region fallthrough
CT: control target
= control target key end

     0   :  { %7 = vsyncpa [#allocation3], 0  ;;  %s651_s0 = inlined_call_operand.hbm [shape: f32[8,128], index: 0, kind: input, shape index: {}]   ;;  %s652_s1 = inlined_call_operand.hbm [shape: f32[16,128], index: 1, kind: input, shape index: {}]   ;;  %s653_s2 = inlined_call_operand.hbm [shape: f32[16,128], index: 2, kind: output, shape index: {}]  }
   0x1   :  { %8 = vsyncpa [#allocation6], 0 }
   0x2   :  { %10 = vsyncpa [#allocation6 + $0x1], 0 }
   0x3   :  { %11 = vsyncpa [#allocation4], 0 }
   0x4   :  { %13 = vsyncpa [#allocation4 + $0x1], 0  ;;  %s485_s9 = smov 0   ;;  %s487_s10 = smov 0  }
   0x5   :  { %s489_s11 = smov 0   ;;  %s491_s12 = smov 0  }
   0x6 LB: > { %s506_s13 = sadd.s32 4294967295, %s465_s12   ;;  %s272_s14 = sadd.s32 4294967294, %s465_s12   ;;  %s465_s12 = sphi %s491_s12, %s676_s12   ;;  %s461_s11 = sphi %s489_s11, %s675_s11   ;;  %s457_s10 = sphi %s487_s10, %s674_s10   ;;  %s453_s9 = sphi %s485_s9, %s673_s9  }
   0x7   : > { %p60_p0 = scmp.ne.s32.totalorder %s457_s10, %s453_s9  ;;  %p654_p1 = scmp.eq.s32.totalorder %s506_s13, 0 }
   0x8   : > { %p90_p3 = scmp.eq.s32.totalorder %s272_s14, 1  ;;  %p273_p5 = scmp.ge.s32.totalorder %s465_s12, 1 }
   0x9   : > { %p515_p4 = por %p654_p1, %p60_p0  ;;  %p97_p7 = scmp.lt.s32.totalorder %s465_s12, 3 }
   0xa   : > { %p520_p6 = por %p90_p3, %p60_p0  ;;  %s467_s18 = smov [#allocation2]  }
   0xb   : > { %s658_s15 = scalar_select %p515_p4, 1, 0 }
   0xc   : > { %s659_s16 = scalar_select %p520_p6, 1, 0 }
   0xd   : > { %p525_p8 = pnand %p273_p5, %p97_p7  ;;  %s110_s19 = sshll.u32 %s467_s18, 4  ;;  %s111_s19 = int_to_ptr.vmem [resolvable:$true] %s110_s19 }
   0xe   : > { %s533_s20 = sadd.s32 1, %s465_s12   ;;  %s47_s24 = sadd.s32 1, %s461_s11 }
   0xf   : > { %s660_s17 = scalar_select %p525_p8, 1, 0 }
  0x10   : > { %p294_p10 = pneg %p525_p8  ;;  %s44_s22 = ssub.s32 %s465_s12, %s533_s20 }
  0x11   : > { %p543_p12 = scmp.eq.s32.totalorder %s44_s22, 0  ;;  %p54_p13 = scmp.ne.s32.totalorder %s461_s11, %s457_s10 }
  0x12   : > { %p537_p11 = pnand %p294_p10, %p654_p1  ;;  %s354_s25 = scalar_lea.vmem %s111_s19, 128 }
  0x13   : > { %p355_p3 = scmp.ne.s32.totalorder %s111_s19, %s354_s25  ;;  %p362_p9 = scmp.lt.s32.totalorder %s111_s19, %s111_s19 }
  0x14   : > { %p345_p0 = pneg %p537_p11  ;;  %p363_p2 = scmp.lt.s32.totalorder %s354_s25, %s354_s25 }
  0x16   : > { %p357_p5 = pnand %p355_p3, %p345_p0  ;;  %p364_p10 = por %p363_p2, %p362_p9 }
  0x18   : > { %p358_p7 = pneg %p357_p5 }
  0x1a   : > { %p365_p1 = pnand %p364_p10, %p358_p7 }
  0x1c   : > { %368 = shalt.err (!%p365_p1)
}
  0x1d   : > { %297 = dma.hbm_to_vmem [thread:$0]  (!%p537_p11), %s651_s0, 128, %s111_s19, [#allocation3]  }
  0x1e   : > { %s560_s28 = scalar_select %p543_p12, %s461_s11, %s47_s24  }
  0x1f   : > { %p55_p1 = scmp.eq.s32.totalorder %s465_s12, 0  ;;  %p663_p2 = scmp.eq.s32.totalorder %s506_s13, 1 }
  0x20   : > { %p307_p0 = scmp.lt.s32.totalorder %s465_s12, 2  ;;  %s121_s30 = sand.u32 1, %s461_s11  }
  0x21   : > { %p568_p9 = por %p663_p2, %p54_p13  ;;  %p56_p3 = por %p55_p1, %p54_p13 }
  0x22   : > { %s276_s3 = sshll.u32 %s121_s30, 3  ;;  %s277_s4 = sshll.u32 %s465_s12, 7 }
  0x23   : > { %s664_s29 = scalar_select %p568_p9, 1, 0 }
  0x24   : > { %s581_s7 = scalar_lea.hbm %s652_s1, %s277_s4  ;;  %s125_s8 = scalar_lea.vmem [#allocation5], %s276_s3 }
  0x25   : > { %s132_s14 = sshll.u32 %s125_s8, 4  ;;  %p583_p11 = pnand %p307_p0, %p56_p3  ;;  %s133_s14 = int_to_ptr.vmem [resolvable:$true] %s132_s14 }
  0x26   : > { %s122_s19 = scalar_lea.sflag [#allocation6], %s121_s30  ;;  %s369_s21 = scalar_lea.hbm %s581_s7, 128 }
  0x27   : > { %p370_p12 = scmp.ne.s32.totalorder %s581_s7, %s369_s21  ;;  %p371_p13 = pneg %p583_p11 }
  0x28   : > { %s374_s24 = scalar_lea.hbm %s652_s1, 256  ;;  %p375_p10 = scmp.lt.s32.totalorder %s581_s7, %s652_s1 }
  0x29   : > { %p372_p5 = pnand %p371_p13, %p370_p12  ;;  %p376_p1 = scmp.lt.s32.totalorder %s374_s24, %s369_s21 }
  0x2b   : > { %p373_p7 = pneg %p372_p5  ;;  %p377_p2 = por %p376_p1, %p375_p10 }
  0x2d   : > { %p378_p0 = pnand %p377_p2, %p373_p7 }
  0x2f   : > { %381 = shalt.err (!%p378_p0)
}
  0x30   : > { %s382_s27 = scalar_lea.vmem %s133_s14, 128  ;;  %s468_s30 = smov [#allocation5]  }
  0x31   : > { %p383_p3 = scmp.ne.s32.totalorder %s133_s14, %s382_s27  ;;  %s387_s3 = sshll.u32 %s468_s30, 4  ;;  %s388_s3 = int_to_ptr.vmem [resolvable:$false] %s387_s3 }
  0x32   : > { %s389_s4 = scalar_lea.vmem %s388_s3, 256  ;;  %p390_p12 = scmp.lt.s32.totalorder %s133_s14, %s388_s3 }
  0x33   : > { %p385_p6 = pnand %p383_p3, %p371_p13  ;;  %p391_p5 = scmp.lt.s32.totalorder %s389_s4, %s382_s27 }
  0x35   : > { %p386_p9 = pneg %p385_p6  ;;  %p392_p4 = por %p391_p5, %p390_p12 }
  0x37   : > { %p393_p8 = pnand %p392_p4, %p386_p9 }
  0x39   : > { %396 = shalt.err (!%p393_p8)
}
  0x3a   : > { %301 = dma.hbm_to_vmem [thread:$0]  (!%p583_p11), %s581_s7, 128, %s133_s14, %s122_s19  }
  0x3b   : > { %p666_p7 = scmp.ne.s32.totalorder %s660_s17, 0 }
  0x3c   : > { %p667_p10 = scmp.eq.s32.totalorder (!%p666_p7), %s506_s13, 0 }
  0x3d   : > { %141 = sbr.rel (%p666_p7) target bundleno = 96 (0x60), region = 28 }
  0x42   : > { %440 = dma.done.wait (%p667_p10), [#allocation3], 128   ;;  %p668_p6 = pmov %p667_p10 }
  0x43   : > { %s608_s5 = sand.u32 1, %s457_s10   ;;  %p669_p4 = scmp.ne.s32.totalorder %s658_s15, 0 }
  0x44   : > { %442 = vsyncadd (%p668_p6), [#allocation3], 4294967168  ;;  %s280_s6 = sshll.u32 %s608_s5, 3  ;;  %s148_s8 = scalar_lea.sflag [#allocation6], %s608_s5 }
  0x45   : > { %s151_s18 = scalar_lea.vmem [#allocation5], %s280_s6 }
  0x46   : > { %444 = dma.done.wait (%p669_p4), %s148_s8, 128  }
  0x47   : > { %446 = vsyncadd (%p669_p4), %s148_s8, 4294967168  ;;  %s171_s17 = scalar_lea.vmem [#allocation7], %s280_s6  ;;  %s283_s14 = sshll.u32 %s506_s13, 7  ;;  %v172_v0 = vld [vmem:[%s151_s18] sm:$0xff]  ;;  %v173_v1 = vld [vmem:[#allocation2] sm:$0xff] }
  0x48   : > { %s190_s7 = sshll.u32 %s171_s17, 4  ;;  %v174_v2 = vadd.f32 %v173_v1, %v172_v0  ;;  %s188_s22 = scalar_lea.hbm %s653_s2, %s283_s14  ;;  %s191_s7 = int_to_ptr.vmem [resolvable:$true] %s190_s7 }
  0x49   : > { %s177_s23 = scalar_lea.sflag [#allocation4], %s608_s5  ;;  %s397_s24 = scalar_lea.vmem %s191_s7, 128 }
  0x4a   : > { %175 = vst [vmem:[%s171_s17] sm:$0xff] %v174_v2  ;;  %p398_p8 = scmp.ne.s32.totalorder %s191_s7, %s397_s24  ;;  %p670_p9 = scmp.ne.s32.totalorder %s664_s29, 0 }
  0x4b   : > { %s469_s15 = smov [#allocation7]  }
  0x4c   : > { %p399_p11 = pnand %p398_p8, %p670_p9  ;;  %s401_s25 = sshll.u32 %s469_s15, 4  ;;  %s402_s25 = int_to_ptr.vmem [resolvable:$false] %s401_s25 }
  0x4d   : > { %s403_s26 = scalar_lea.vmem %s402_s25, 256  ;;  %p404_p1 = scmp.lt.s32.totalorder %s191_s7, %s402_s25 }
  0x4e   : > { %p400_p13 = pneg %p399_p11  ;;  %p405_p2 = scmp.lt.s32.totalorder %s403_s26, %s397_s24 }
  0x50   : > { %p406_p0 = por %p405_p2, %p404_p1 }
  0x52   : > { %p407_p3 = pnand %p406_p0, %p400_p13 }
  0x54   : > { %410 = shalt.err (!%p407_p3)
}
  0x55   : > { %s411_s13 = scalar_lea.hbm %s188_s22, 128  ;;  %s415_s3 = scalar_lea.hbm %s653_s2, 256 }
  0x56   : > { %p412_p12 = scmp.ne.s32.totalorder %s188_s22, %s411_s13  ;;  %p416_p10 = scmp.lt.s32.totalorder %s188_s22, %s653_s2 }
  0x57   : > { %p417_p6 = scmp.lt.s32.totalorder %s415_s3, %s411_s13 }
  0x58   : > { %p413_p5 = pnand %p412_p12, %p670_p9 }
  0x59   : > { %p418_p4 = por %p417_p6, %p416_p10 }
  0x5a   : > { %p414_p7 = pneg %p413_p5 }
  0x5c   : > { %p419_p8 = pnand %p418_p4, %p414_p7 }
  0x5e   : > { %422 = shalt.err (!%p419_p8)
}
  0x5f   : > { %292 = dma.vmem_to_hbm [thread:$0]  (%p670_p9), %s191_s7, 128, %s188_s22, %s177_s23  }
  0x60 PF: > { %s202_s6 = sand.u32 1, %s453_s9   ;;  %p671_p11 = scmp.ne.s32.totalorder %s659_s16, 0 }
  0x61   : > { %p672_p13 = scmp.ge.s32.totalorder %s465_s12, 2  ;;  %s203_s8 = scalar_lea.sflag [#allocation4], %s202_s6 }
  0x63   : > { %p303_p1 = pnand %p672_p13, %p671_p11 }
  0x65   : > { %p304_p2 = pneg %p303_p1 }
  0x67   : > { %448 = dma.done.wait (%p304_p2), %s203_s8, 128  }
  0x68   : > { %450 = vsyncadd (%p304_p2), %s203_s8, 4294967168  ;;  %p16_p0 = scmp.ge.s32.totalorder %s533_s20, 4   ;;  %s673_s9 = smov %s457_s10 }
  0x69   : > { %s674_s10 = smov %s461_s11  ;;  %s675_s11 = smov %s560_s28 }
  0x6a   : > { %s676_s12 = smov %s533_s20  ;;  %18 = sbr.rel (!%p16_p0) target bundleno = 6 (0x6), region = 78 }
  0x6f   :  { %208 = vsyncpa [#allocation3], 1 }
  0x70   :  { %210 = vsyncpa [#allocation3 + $0x1], 1 }
  0x71   :  { %211 = vsyncpa [#allocation6], 1 }
  0x72   :  { %213 = vsyncpa [#allocation6 + $0x1], 1 }
  0x73   :  { %214 = vsyncpa [#allocation4], 1 }
  0x74   :  { %216 = vsyncpa [#allocation4 + $0x1], 1 }

// kernel: tpu_custom_call.1
= control target key start
LH: loop header
LB: loop body
LE: loop exit
PB: predicated region body
PF: predicated region fallthrough
CT: control target
= control target key end

     0   :  { %s1476_s0 = inlined_call_operand.hbm [shape: f32[16,128], index: 0, kind: input, shape index: {}]   ;;  %s1477_s1 = inlined_call_operand.hbm [shape: f32[128,128], index: 1, kind: input, shape index: {}]   ;;  %s1478_s2 = inlined_call_operand.vmem [shape: f32[1,128], index: 2, kind: input, shape index: {}]   ;;  %s1479_s3 = inlined_call_operand.hbm [shape: f32[128,128], index: 3, kind: input, shape index: {}]   ;;  %s1480_s4 = inlined_call_operand.vmem [shape: f32[1,128], index: 4, kind: input, shape index: {}]   ;;  %s1481_s5 = inlined_call_operand.hbm [shape: f32[128,128], index: 5, kind: input, shape index: {}]   ;;  %s1482_s6 = inlined_call_operand.vmem [shape: f32[1,128], index: 6, kind: input, shape index: {}]   ;;  %s1483_s7 = inlined_call_operand.hbm [shape: f32[16,128], index: 7, kind: output, shape index: {}]  }
   0x1   :  { %1488 = sst [smem:[#allocation15_spill]] %s1477_s1 }
   0x2   :  { %1489 = sst [smem:[#allocation16_spill]] %s1479_s3 }
   0x3   :  { %12 = vsyncpa [#allocation3], 0 }
   0x4   :  { %14 = vsyncpa [#allocation3 + $0x1], 0 }
   0x5   :  { %15 = vsyncpa [#allocation6], 0 }
   0x6   :  { %16 = vsyncpa [#allocation9], 0 }
   0x7   :  { %17 = vsyncpa [#allocation4], 0 }
   0x8   :  { %19 = vsyncpa [#allocation4 + $0x1], 0  ;;  %s1223_s24 = smov 0   ;;  %s1225_s25 = smov 0  }
   0x9   :  { %s1227_s26 = smov 0   ;;  %s1229_s27 = smov 0  }
   0xa LB: > { %s1244_s28 = sadd.s32 4294967295, %s1172_s27   ;;  %s736_s29 = sadd.s32 4294967294, %s1172_s27   ;;  %s1172_s27 = sphi %s1229_s27, %s1511_s27   ;;  %s1168_s26 = sphi %s1227_s26, %s1510_s26   ;;  %s1164_s25 = sphi %s1225_s25, %s1509_s25   ;;  %s1160_s24 = sphi %s1223_s24, %s1508_s24  }
   0xb   : > { %p45_p0 = scmp.ne.s32.totalorder %s1164_s25, %s1160_s24  ;;  %p1484_p1 = scmp.eq.s32.totalorder %s1244_s28, 0 }
   0xc   : > { %p201_p3 = scmp.eq.s32.totalorder %s736_s29, 1  ;;  %p737_p5 = scmp.ge.s32.totalorder %s1172_s27, 1 }
   0xd   : > { %p1253_p4 = por %p1484_p1, %p45_p0  ;;  %p208_p7 = scmp.lt.s32.totalorder %s1172_s27, 3 }
   0xe   : > { %p1258_p6 = por %p201_p3, %p45_p0  ;;  %s1174_s10 = smov [#allocation5]  }
   0xf   : > { %s1490_s30 = scalar_select %p1253_p4, 1, 0 }
  0x10   : > { %s1491_s8 = scalar_select %p1258_p6, 1, 0 }
  0x11   : > { %p1263_p8 = pnand %p737_p5, %p208_p7  ;;  %s220_s11 = sshll.u32 %s1174_s10, 4  ;;  %s221_s11 = int_to_ptr.vmem [resolvable:$true] %s220_s11 }
  0x12   : > { %s1175_s13 = smov [#allocation7]   ;;  %s1176_s15 = smov [#allocation8]  }
  0x13   : > { %s1492_s9 = scalar_select %p1263_p8, 1, 0 }
  0x14   : > { %p929_p9 = pneg %p1263_p8  ;;  %s236_s14 = sshll.u32 %s1175_s13, 4  ;;  %s237_s14 = int_to_ptr.vmem [resolvable:$true] %s236_s14 }
  0x15   : > { %s252_s16 = sshll.u32 %s1176_s15, 4  ;;  %s1005_s17 = scalar_lea.vmem %s221_s11, 2048  ;;  %s253_s16 = int_to_ptr.vmem [resolvable:$true] %s252_s16 }
  0x16   : > { %p1272_p11 = pnand %p929_p9, %p1484_p1  ;;  %p1006_p13 = scmp.ne.s32.totalorder %s221_s11, %s1005_s17 }
  0x17   : > { %p1013_p5 = scmp.lt.s32.totalorder %s221_s11, %s221_s11  ;;  %p1014_p7 = scmp.lt.s32.totalorder %s1005_s17, %s1005_s17 }
  0x18   : > { %p996_p12 = pneg %p1272_p11 }
  0x19   : > { %p1015_p9 = por %p1014_p7, %p1013_p5 }
  0x1a   : > { %p1008_p0 = pnand %p1006_p13, %p996_p12 }
  0x1c   : > { %p1009_p3 = pneg %p1008_p0 }
  0x1e   : > { %p1016_p10 = pnand %p1015_p9, %p1009_p3 }
  0x20   : > { %1019 = shalt.err (!%p1016_p10)
}
  0x21   : > { %s1177_s18 = smov 128   ;;  %s1178_s19 = smov 8  }
  0x22   : > { %s1494_s1 = sld [smem:[#allocation15_spill]]  ;;  %s1031_s22 = scalar_lea.vmem %s237_s14, 2048 }
  0x23   : > { %p1032_p1 = scmp.ne.s32.totalorder %s237_s14, %s1031_s22  ;;  %p1039_p2 = scmp.lt.s32.totalorder %s237_s14, %s237_s14 }
  0x24   : > { %p1040_p6 = scmp.lt.s32.totalorder %s1031_s22, %s1031_s22 }
  0x25   : > { %p1034_p13 = pnand %p1032_p1, %p996_p12 }
  0x26   : > { %p1041_p5 = por %p1040_p6, %p1039_p2 }
  0x27   : > { %p1035_p0 = pneg %p1034_p13 }
  0x28   : > { %932 = dma.hbm_to_vmem [thread:$0]  (!%p1272_p11), %s1494_s1, 2048, %s221_s11, [#allocation6], %s1177_s18, %s1177_s18, %s1178_s19  }
  0x29   : > { %p1042_p3 = pnand %p1041_p5, %p1035_p0 }
  0x2b   : > { %1045 = shalt.err (!%p1042_p3)
}
  0x2c   : > { %s1495_s3 = sld [smem:[#allocation16_spill]]  ;;  %s1057_s10 = scalar_lea.vmem %s253_s16, 2048 }
  0x2d   : > { %p1058_p10 = scmp.ne.s32.totalorder %s253_s16, %s1057_s10  ;;  %p1065_p9 = scmp.lt.s32.totalorder %s253_s16, %s253_s16 }
  0x2e   : > { %p1066_p13 = scmp.lt.s32.totalorder %s1057_s10, %s1057_s10 }
  0x2f   : > { %p1060_p7 = pnand %p1058_p10, %p996_p12 }
  0x30   : > { %p1067_p4 = por %p1066_p13, %p1065_p9 }
  0x31   : > { %p1061_p1 = pneg %p1060_p7 }
  0x32   : > { %935 = dma.hbm_to_vmem [thread:$0]  (!%p1272_p11), %s1495_s3, 2048, %s237_s14, [#allocation6], %s1177_s18, %s1177_s18, %s1178_s19  }
  0x33   : > { %p1068_p2 = pnand %p1067_p4, %p1061_p1 }
  0x35   : > { %1071 = shalt.err (!%p1068_p2)
}
  0x36   : > { %938 = dma.hbm_to_vmem [thread:$0]  (!%p1272_p11), %s1481_s5, 2048, %s253_s16, [#allocation9], %s1177_s18, %s1177_s18, %s1178_s19  }
  0x37   : > { %s1303_s14 = sadd.s32 1, %s1172_s27   ;;  %s32_s12 = sadd.s32 1, %s1168_s26 }
  0x38   : > { %s29_s15 = ssub.s32 %s1172_s27, %s1303_s14  ;;  %p39_p6 = scmp.ne.s32.totalorder %s1168_s26, %s1164_s25 }
  0x39   : > { %p30_p4 = scmp.eq.s32.totalorder %s29_s15, 0  ;;  %p40_p12 = scmp.eq.s32.totalorder %s1172_s27, 0 }
  0x3a   : > { %p950_p0 = scmp.lt.s32.totalorder %s1172_s27, 2  ;;  %p1496_p3 = scmp.eq.s32.totalorder %s1244_s28, 1 }
  0x3b   : > { %s1313_s17 = scalar_select %p30_p4, %s1168_s26, %s32_s12  }
  0x3c   : > { %p41_p5 = por %p40_p12, %p39_p6  ;;  %p1317_p10 = por %p1496_p3, %p39_p6 }
  0x3d   : > { %s269_s21 = sand.u32 1, %s1168_s26   ;;  %s743_s22 = sshll.u32 %s1172_s27, 7 }
  0x3e   : > { %s1497_s20 = scalar_select %p1317_p10, 1, 0 }
  0x3f   : > { %s742_s16 = sshll.u32 %s269_s21, 3  ;;  %s1326_s23 = scalar_lea.hbm %s1476_s0, %s743_s22 }
  0x40   : > { %s273_s29 = scalar_lea.vmem [#allocation2], %s742_s16  ;;  %p1328_p11 = pnand %p950_p0, %p41_p5 }
  0x41   : > { %s280_s10 = sshll.u32 %s273_s29, 4  ;;  %s270_s13 = scalar_lea.sflag [#allocation3], %s269_s21  ;;  %s281_s10 = int_to_ptr.vmem [resolvable:$true] %s280_s10 }
  0x42   : > { %s1072_s15 = scalar_lea.hbm %s1326_s23, 128  ;;  %p1074_p1 = pneg %p1328_p11 }
  0x43   : > { %p1073_p7 = scmp.ne.s32.totalorder %s1326_s23, %s1072_s15  ;;  %s1077_s18 = scalar_lea.hbm %s1476_s0, 256 }
  0x44   : > { %p1078_p2 = scmp.lt.s32.totalorder %s1326_s23, %s1476_s0  ;;  %p1079_p4 = scmp.lt.s32.totalorder %s1077_s18, %s1072_s15 }
  0x45   : > { %p1075_p9 = pnand %p1074_p1, %p1073_p7 }
  0x46   : > { %p1080_p6 = por %p1079_p4, %p1078_p2 }
  0x47   : > { %p1076_p13 = pneg %p1075_p9 }
  0x49   : > { %p1081_p12 = pnand %p1080_p6, %p1076_p13 }
  0x4b   : > { %1084 = shalt.err (!%p1081_p12)
}
  0x4c   : > { %s1085_s29 = scalar_lea.vmem %s281_s10, 128  ;;  %s1179_s21 = smov [#allocation2]  }
  0x4d   : > { %p1086_p0 = scmp.ne.s32.totalorder %s281_s10, %s1085_s29  ;;  %s1090_s1 = sshll.u32 %s1179_s21, 4  ;;  %s1091_s1 = int_to_ptr.vmem [resolvable:$false] %s1090_s1 }
  0x4e   : > { %s1092_s3 = scalar_lea.vmem %s1091_s1, 256  ;;  %p1093_p7 = scmp.lt.s32.totalorder %s281_s10, %s1091_s1 }
  0x4f   : > { %p1088_p5 = pnand %p1086_p0, %p1074_p1  ;;  %p1094_p9 = scmp.lt.s32.totalorder %s1092_s3, %s1085_s29 }
  0x51   : > { %p1089_p3 = pneg %p1088_p5  ;;  %p1095_p10 = por %p1094_p9, %p1093_p7 }
  0x53   : > { %p1096_p8 = pnand %p1095_p10, %p1089_p3 }
  0x55   : > { %1099 = shalt.err (!%p1096_p8)
}
  0x56   : > { %942 = dma.hbm_to_vmem [thread:$0]  (!%p1328_p11), %s1326_s23, 128, %s281_s10, %s270_s13  }
  0x57   : > { %p1499_p13 = scmp.ne.s32.totalorder %s1492_s9, 0 }
  0x58   : > { %s1349_s15 = sand.u32 (!%p1499_p13), 1, %s1164_s25   ;;  %p1500_p8 = scmp.ne.s32.totalorder (!%p1499_p13), %s1490_s30, 0 }
  0x59   : > { %289 = sbr.rel (%p1499_p13) target bundleno = 741 (0x2e5), region = 48  ;;  %s745_s12 = sshll.u32 (!%p1499_p13), %s1349_s15, 3 }
  0x5a   : > { %s292_s1 = scalar_lea.sflag (!%p1499_p13), [#allocation3], %s1349_s15  ;;  %s1355_s3 = scalar_lea.vmem (!%p1499_p13), [#allocation2], %s745_s12 }
  0x5e   : > { %1143 = dma.done.wait (%p1500_p8), %s292_s1, 128  }
  0x5f   : > { %1145 = vsyncadd (%p1500_p8), %s292_s1, 4294967168  ;;  %p1501_p10 = scmp.eq.s32.totalorder %s1244_s28, 0 }
  0x61   : > { %1147 = dma.done.wait (%p1501_p10), [#allocation6], 4096   ;;  %p1502_p11 = pmov %p1501_p10 }
  0x62   : > { %p1503_p1 = pmov %p1501_p10 }
  0x63   : > { %1149 = vsyncadd (%p1502_p11), [#allocation6], 4294963200 }
  0x64   : > { %1151 = dma.done.wait (%p1503_p1), [#allocation9], 2048   ;;  %p1504_p2 = pmov %p1503_p1 }
  0x65   : > { %v1180_v0 = vmov 0.0   ;;  %vm1181_vm0 = vmmov 0   ;;  %v354_v1 = vld [vmem:[#allocation5 + $0x78] sm:$0xff]  ;;  %v353_v2 = vld [vmem:[#allocation5 + $0x70] sm:$0xff]  ;;  %v352_v3 = vld [vmem:[#allocation5 + $0x68] sm:$0xff]  ;;  %s754_s22 = sshll.u32 %s1244_s28, 7 }
  0x66   : > { %1153 = vsyncadd (%p1504_p2), [#allocation9], 4294965248  ;;  %808 = vmatprep.subr.mxu0 %v1180_v0  ;;  %840 = vmatprep.mubr.msk.f32.mxu0 %vm1181_vm0, %v1180_v0  ;;  %v351_v4 = vld [vmem:[#allocation5 + $0x60] sm:$0xff]  ;;  %v449_v5 = vld [vmem:[#allocation7 + $0x78] sm:$0xff]  ;;  %s337_s18 = scalar_lea.vmem [#allocation10], %s745_s12  ;;  %s1439_s21 = scalar_lea.hbm %s1483_s7, %s754_s22 }
  0x67   : > { %843 = vmatprep.subr.mxu1 %v1180_v0  ;;  %875 = vmatprep.mubr.msk.f32.mxu1 %vm1181_vm0, %v1180_v0  ;;  %v350_v6 = vld [vmem:[#allocation5 + $0x58] sm:$0xff]  ;;  %v448_v7 = vld [vmem:[#allocation7 + $0x70] sm:$0xff]  ;;  %v447_v8 = vld [vmem:[#allocation7 + $0x68] sm:$0xff]  ;;  %s637_s19 = sshll.u32 %s337_s18, 4  ;;  %s624_s1 = scalar_lea.sflag [#allocation4], %s1349_s15  ;;  %s638_s19 = int_to_ptr.vmem [resolvable:$true] %s637_s19 }
  0x68   : > { %809 = vmatpush3.msra.mxu0 %v354_v1  ;;  %844 = vmatpush3.msra.mxu1 %v449_v5  ;;  %v349_v9 = vld [vmem:[#allocation5 + $0x50] sm:$0xff]  ;;  %v446_v10 = vld [vmem:[#allocation7 + $0x60] sm:$0xff]  ;;  %v348_v11 = vld [vmem:[#allocation5 + $0x48] sm:$0xff]  ;;  %p1505_p6 = scmp.ne.s32.totalorder %s1497_s20, 0  ;;  %s1182_s28 = smov [#allocation10]  }
  0x69   : > { %810 = vmatprep.subr.mxu0 %v1180_v0  ;;  %845 = vmatprep.subr.mxu1 %v1180_v0  ;;  %v445_v12 = vld [vmem:[#allocation7 + $0x58] sm:$0xff]  ;;  %v347_v13 = vld [vmem:[#allocation5 + $0x40] sm:$0xff]  ;;  %v444_v14 = vld [vmem:[#allocation7 + $0x50] sm:$0xff]  ;;  %s1104_s30 = sshll.u32 %s1182_s28, 4  ;;  %s1105_s30 = int_to_ptr.vmem [resolvable:$false] %s1104_s30 }
  0x6a   : > { %811 = vmatpush3.msra.mxu0 %v353_v2  ;;  %846 = vmatpush3.msra.mxu1 %v448_v7  ;;  %v346_v15 = vld [vmem:[#allocation5 + $0x38] sm:$0xff]  ;;  %v443_v16 = vld [vmem:[#allocation7 + $0x48] sm:$0xff]  ;;  %v345_v17 = vld [vmem:[#allocation5 + $0x30] sm:$0xff]  ;;  %s1106_s12 = scalar_lea.vmem %s1105_s30, 256  ;;  %p1107_p5 = scmp.lt.s32.totalorder %s638_s19, %s1105_s30 }
  0x6b   : > { %812 = vmatprep.subr.mxu0 %v1180_v0  ;;  %847 = vmatprep.subr.mxu1 %v1180_v0  ;;  %v442_v18 = vld [vmem:[#allocation7 + $0x40] sm:$0xff]  ;;  %v344_v19 = vld [vmem:[#allocation5 + $0x28] sm:$0xff]  ;;  %v441_v20 = vld [vmem:[#allocation7 + $0x38] sm:$0xff] }
  0x6c   : > { %813 = vmatpush3.msra.mxu0 %v352_v3  ;;  %848 = vmatpush3.msra.mxu1 %v447_v8  ;;  %v343_v21 = vld [vmem:[#allocation5 + $0x20] sm:$0xff]  ;;  %v440_v22 = vld [vmem:[#allocation7 + $0x30] sm:$0xff]  ;;  %v342_v23 = vld [vmem:[#allocation5 + $0x18] sm:$0xff] }
  0x6d   : > { %814 = vmatprep.subr.mxu0 %v1180_v0  ;;  %849 = vmatprep.subr.mxu1 %v1180_v0  ;;  %v439_v24 = vld [vmem:[#allocation7 + $0x28] sm:$0xff]  ;;  %v341_v25 = vld [vmem:[#allocation5 + $0x10] sm:$0xff]  ;;  %v438_v26 = vld [vmem:[#allocation7 + $0x20] sm:$0xff] }
  0x6e   : > { %815 = vmatpush3.msra.mxu0 %v351_v4  ;;  %850 = vmatpush3.msra.mxu1 %v446_v10  ;;  %v340_v27 = vld [vmem:[#allocation5 + $0x8] sm:$0xff]  ;;  %v339_v28 = vld [vmem:[#allocation5] sm:$0xff]  ;;  %v338_v29 = vld [vmem:[%s1355_s3] sm:$0xff]  ;;  %s1100_s3 = scalar_lea.vmem %s638_s19, 128 }
  0x6f   : > { %816 = vmatprep.subr.mxu0 %v1180_v0  ;;  %851 = vmatprep.subr.mxu1 %v1180_v0  ;;  %v437_v30 = vld [vmem:[#allocation7 + $0x18] sm:$0xff]  ;;  %v436_v31 = vld [vmem:[#allocation7 + $0x10] sm:$0xff]  ;;  %v435_v32 = vld [vmem:[#allocation7 + $0x8] sm:$0xff]  ;;  %p1101_p4 = scmp.ne.s32.totalorder %s638_s19, %s1100_s3  ;;  %p1108_p3 = scmp.lt.s32.totalorder %s1106_s12, %s1100_s3 }
  0x70   : > { %817 = vmatpush3.msra.mxu0 %v350_v6  ;;  %852 = vmatpush3.msra.mxu1 %v445_v12  ;;  %v434_v33 = vld [vmem:[#allocation7] sm:$0xff]  ;;  %v544_v34 = vld [vmem:[#allocation8 + $0x78] sm:$0xff]  ;;  %v543_v35 = vld [vmem:[#allocation8 + $0x70] sm:$0xff] }
  0x71   : > { %818 = vmatprep.subr.mxu0 %v1180_v0  ;;  %853 = vmatprep.subr.mxu1 %v1180_v0  ;;  %v542_v36 = vld [vmem:[#allocation8 + $0x68] sm:$0xff]  ;;  %v541_v37 = vld [vmem:[#allocation8 + $0x60] sm:$0xff]  ;;  %v540_v38 = vld [vmem:[#allocation8 + $0x58] sm:$0xff]  ;;  %p1102_p12 = pnand %p1101_p4, %p1505_p6  ;;  %p1109_p7 = por %p1108_p3, %p1107_p5 }
  0x72   : > { %819 = vmatpush3.msra.mxu0 %v349_v9  ;;  %854 = vmatpush3.msra.mxu1 %v444_v14  ;;  %v539_v39 = vld [vmem:[#allocation8 + $0x50] sm:$0xff]  ;;  %v538_v40 = vld [vmem:[#allocation8 + $0x48] sm:$0xff]  ;;  %v537_v41 = vld [vmem:[#allocation8 + $0x40] sm:$0xff] }
  0x73   : > { %820 = vmatprep.subr.mxu0 %v1180_v0  ;;  %855 = vmatprep.subr.mxu1 %v1180_v0  ;;  %v536_v42 = vld [vmem:[#allocation8 + $0x38] sm:$0xff]  ;;  %v535_v43 = vld [vmem:[#allocation8 + $0x30] sm:$0xff]  ;;  %v534_v44 = vld [vmem:[#allocation8 + $0x28] sm:$0xff]  ;;  %p1103_p0 = pneg %p1102_p12 }
  0x74   : > { %821 = vmatpush3.msra.mxu0 %v348_v11  ;;  %856 = vmatpush3.msra.mxu1 %v443_v16  ;;  %v533_v45 = vld [vmem:[#allocation8 + $0x20] sm:$0xff]  ;;  %v750_v46 = vld [vmem:[%s1478_s2] ss:$0 sm:$0xff]  ;;  %v532_v52 = vld [vmem:[#allocation8 + $0x18] sm:$0xff] }
  0x75   : > { %822 = vmatprep.subr.mxu0 %v1180_v0  ;;  %857 = vmatprep.subr.mxu1 %v1180_v0  ;;  %v531_v53 = vld [vmem:[#allocation8 + $0x10] sm:$0xff]  ;;  %v530_v54 = vld [vmem:[#allocation8 + $0x8] sm:$0xff]  ;;  %v529_v55 = vld [vmem:[#allocation8] sm:$0xff]  ;;  %p1110_p9 = pnand %p1109_p7, %p1103_p0 }
  0x76   : > { %823 = vmatpush3.msra.mxu0 %v347_v13  ;;  %858 = vmatpush3.msra.mxu1 %v442_v18  ;;  %v751_v56 = vld [vmem:[%s1480_s4] ss:$0 sm:$0xff] }
  0x77   : > { %824 = vmatprep.subr.mxu0 %v1180_v0  ;;  %859 = vmatprep.subr.mxu1 %v1180_v0  ;;  %v752_v62 = vld [vmem:[%s1482_s6] ss:$0 sm:$0xff] }
  0x78   : > { %825 = vmatpush3.msra.mxu0 %v346_v15  ;;  %860 = vmatpush3.msra.mxu1 %v441_v20 }
  0x79   : > { %826 = vmatprep.subr.mxu0 %v1180_v0  ;;  %861 = vmatprep.subr.mxu1 %v1180_v0 }
  0x7a   : > { %827 = vmatpush3.msra.mxu0 %v345_v17  ;;  %862 = vmatpush3.msra.mxu1 %v440_v22 }
  0x7b   : > { %828 = vmatprep.subr.mxu0 %v1180_v0  ;;  %863 = vmatprep.subr.mxu1 %v1180_v0 }
  0x7c   : > { %829 = vmatpush3.msra.mxu0 %v344_v19  ;;  %864 = vmatpush3.msra.mxu1 %v439_v24 }
  0x7d   : > { %830 = vmatprep.subr.mxu0 %v1180_v0  ;;  %865 = vmatprep.subr.mxu1 %v1180_v0 }
  0x7e   : > { %831 = vmatpush3.msra.mxu0 %v343_v21  ;;  %866 = vmatpush3.msra.mxu1 %v438_v26 }
  0x7f   : > { %832 = vmatprep.subr.mxu0 %v1180_v0  ;;  %867 = vmatprep.subr.mxu1 %v1180_v0 }
  0x80   : > { %833 = vmatpush3.msra.mxu0 %v342_v23  ;;  %868 = vmatpush3.msra.mxu1 %v437_v30 }
  0x81   : > { %834 = vmatprep.subr.mxu0 %v1180_v0  ;;  %869 = vmatprep.subr.mxu1 %v1180_v0 }
  0x82   : > { %835 = vmatpush3.msra.mxu0 %v341_v25  ;;  %870 = vmatpush3.msra.mxu1 %v436_v31 }
  0x83   : > { %836 = vmatprep.subr.mxu0 %v1180_v0  ;;  %871 = vmatprep.subr.mxu1 %v1180_v0 }
  0x84   : > { %837 = vmatpush3.msra.mxu0 %v340_v27  ;;  %872 = vmatpush3.msra.mxu1 %v435_v32 }
  0x85   : > { %838 = vmatprep.subr.mxu0 %v1180_v0  ;;  %873 = vmatprep.subr.mxu1 %v1180_v0 }
  0x86   : > { %839 = vmatpush3.msra.mxu0 %v339_v28  ;;  %874 = vmatpush3.msra.mxu1 %v434_v33 }
  0x87   : > { %841 = vmatmul.mubr.f32.vlgmr.msra.gmra.mxu0 %v338_v29  ;;  %878 = vmatprep.subr.mxu0 %v1180_v0 }
  0x88   : > { %910 = vmatprep.mubr.msk.f32.mxu0 %vm1181_vm0, %v1180_v0  ;;  %879 = vmatpush3.msra.mxu0 %v544_v34 }
  0x89   : > { %880 = vmatprep.subr.mxu0 %v1180_v0 }
  0x8a   : > { %881 = vmatpush3.msra.mxu0 %v543_v35 }
  0x8b   : > { %882 = vmatprep.subr.mxu0 %v1180_v0 }
  0x8c   : > { %883 = vmatpush3.msra.mxu0 %v542_v36 }
  0x8d   : > { %884 = vmatprep.subr.mxu0 %v1180_v0 }
  0x8e   : > { %885 = vmatpush3.msra.mxu0 %v541_v37 }
  0x8f   : > { %886 = vmatprep.subr.mxu0 %v1180_v0 }
  0x90   : > { %887 = vmatpush3.msra.mxu0 %v540_v38 }
  0x91   : > { %888 = vmatprep.subr.mxu0 %v1180_v0 }
  0x92   : > { %889 = vmatpush3.msra.mxu0 %v539_v39 }
  0x93   : > { %890 = vmatprep.subr.mxu0 %v1180_v0 }
  0x94   : > { %891 = vmatpush3.msra.mxu0 %v538_v40 }
  0x95   : > { %892 = vmatprep.subr.mxu0 %v1180_v0 }
  0x96   : > { %893 = vmatpush3.msra.mxu0 %v537_v41 }
  0x97   : > { %894 = vmatprep.subr.mxu0 %v1180_v0 }
  0x98   : > { %895 = vmatpush3.msra.mxu0 %v536_v42 }
  0x99   : > { %896 = vmatprep.subr.mxu0 %v1180_v0 }
  0x9a   : > { %897 = vmatpush3.msra.mxu0 %v535_v43 }
  0x9b   : > { %898 = vmatprep.subr.mxu0 %v1180_v0 }
  0x9c   : > { %899 = vmatpush3.msra.mxu0 %v534_v44 }
  0x9d   : > { %900 = vmatprep.subr.mxu0 %v1180_v0 }
  0x9e   : > { %901 = vmatpush3.msra.mxu0 %v533_v45 }
  0x9f   : > { %902 = vmatprep.subr.mxu0 %v1180_v0 }
  0xa0   : > { %903 = vmatpush3.msra.mxu0 %v532_v52 }
  0xa1   : > { %904 = vmatprep.subr.mxu0 %v1180_v0 }
  0xa2   : > { %905 = vmatpush3.msra.mxu0 %v531_v53 }
  0xa3   : > { %906 = vmatprep.subr.mxu0 %v1180_v0 }
  0xa4   : > { %907 = vmatpush3.msra.mxu0 %v530_v54 }
  0xa5   : > { %908 = vmatprep.subr.mxu0 %v1180_v0 }
  0xa6   : > { %909 = vmatpush3.msra.mxu0 %v529_v55 }
 0x147   : > { %v428_v47 = vpop.f32.mrf.mxu0 }
 0x148   : > { %v429_v48 = vadd.f32 %v750_v46, %v428_v47 }
 0x149   : > { %v842_v49 = vpop.f32.mrf.mxu0 }
 0x14a   : > { %v432_v50 = vmul.f32 0.01, %v429_v48 }
 0x14c   : > { %v433_v51 = vmax.f32 %v429_v48, %v432_v50 }
 0x14e   : > { %876 = vmatmul.mubr.f32.vlgmr.msra.gmra.mxu1 %v433_v51 }
 0x20e   : > { %v523_v57 = vpop.f32.mrf.mxu1 }
 0x20f   : > { %v524_v58 = vadd.f32 %v751_v56, %v523_v57 }
 0x210   : > { %v877_v59 = vpop.f32.mrf.mxu1 }
 0x211   : > { %v527_v60 = vmul.f32 0.01, %v524_v58 }
 0x213   : > { %v528_v61 = vmax.f32 %v524_v58, %v527_v60 }
 0x215   : > { %911 = vmatmul.mubr.f32.vlgmr.msra.gmra.mxu0 %v528_v61 }
 0x2d5   : > { %v618_v63 = vpop.f32.mrf.mxu0 }
 0x2d6   : > { %v619_v0 = vadd.f32 %v752_v62, %v618_v63 }
 0x2d7   : > { %v912_v1 = vpop.f32.mrf.mxu0 }
 0x2d8   : > { %622 = vst [vmem:[%s337_s18] sm:$0xff] %v619_v0 }
 0x2d9   : > { %1113 = shalt.err (!%p1110_p9)
}
 0x2da   : > { %s1114_s9 = scalar_lea.hbm %s1439_s21, 128  ;;  %s1118_s10 = scalar_lea.hbm %s1483_s7, 256 }
 0x2db   : > { %p1115_p13 = scmp.ne.s32.totalorder %s1439_s21, %s1114_s9  ;;  %p1119_p11 = scmp.lt.s32.totalorder %s1439_s21, %s1483_s7 }
 0x2dc   : > { %p1120_p1 = scmp.lt.s32.totalorder %s1118_s10, %s1114_s9 }
 0x2dd   : > { %p1116_p8 = pnand %p1115_p13, %p1505_p6 }
 0x2de   : > { %p1121_p2 = por %p1120_p1, %p1119_p11 }
 0x2df   : > { %p1117_p10 = pneg %p1116_p8 }
 0x2e1   : > { %p1122_p4 = pnand %p1121_p2, %p1117_p10 }
 0x2e3   : > { %1125 = shalt.err (!%p1122_p4)
}
 0x2e4   : > { %927 = dma.vmem_to_hbm [thread:$0]  (%p1505_p6), %s638_s19, 128, %s1439_s21, %s624_s1  }
 0x2e5 PF: > { %s649_s22 = sand.u32 1, %s1160_s24   ;;  %p1506_p12 = scmp.ne.s32.totalorder %s1491_s8, 0 }
 0x2e6   : > { %p1507_p0 = scmp.ge.s32.totalorder %s1172_s27, 2  ;;  %s650_s18 = scalar_lea.sflag [#allocation4], %s649_s22 }
 0x2e8   : > { %p944_p5 = pnand %p1507_p0, %p1506_p12 }
 0x2ea   : > { %p945_p3 = pneg %p944_p5 }
 0x2ec   : > { %1155 = dma.done.wait (%p945_p3), %s650_s18, 128  }
 0x2ed   : > { %1157 = vsyncadd (%p945_p3), %s650_s18, 4294967168  ;;  %p22_p7 = scmp.ge.s32.totalorder %s1303_s14, 4   ;;  %s1508_s24 = smov %s1164_s25 }
 0x2ee   : > { %s1509_s25 = smov %s1168_s26  ;;  %s1510_s26 = smov %s1313_s17 }
 0x2ef   : > { %s1511_s27 = smov %s1303_s14  ;;  %24 = sbr.rel (!%p22_p7) target bundleno = 10 (0xa), region = 105 }
 0x2f4   :  { %655 = vsyncpa [#allocation3], 1 }
 0x2f5   :  { %657 = vsyncpa [#allocation3 + $0x1], 1 }
 0x2f6   :  { %658 = vsyncpa [#allocation6], 1 }
 0x2f7   :  { %659 = vsyncpa [#allocation9], 1 }
 0x2f8   :  { %660 = vsyncpa [#allocation4], 1 }
 0x2f9   :  { %662 = vsyncpa [#allocation4 + $0x1], 1 }

</bundles_post_ra>
